<compile_context>
chip_gen: v6e
topology: v6e:2x2x1
jax: 0.10.0
libtpu: 0.0.40
codegen_flags: <defaults>
</compile_context>

<pallas_src>
import jax
import jax.numpy as jnp
from jax.experimental import pallas as pl
from jax.experimental.pallas import tpu as pltpu


def _round_up(n, m):
    return (n + m - 1) // m * m


def _pick_lane_tile(m, max_lane_tile):
    """128-multiple lane tile; >=2 tiles when M allows (feeds both v7x TCs)."""
    tm = min(max_lane_tile, _round_up(m, 128))
    if m >= 256:
        tm = min(tm, _round_up(pl.cdiv(m, 2), 128))
    return max(128, (tm // 128) * 128)


# ---------------------------------------------------------------------------
# Pallas kernels
# ---------------------------------------------------------------------------
def _conv_pool_kernel(c_ref, w_ref, b_ref, o_ref):
    """Fused conv(valid, s=1) + bias + ReLU + MaxPool2d(2,2).

    c_ref: [4, K, tm] bf16 -- im2col restricted to the 4 pooling offsets,
           packed into one block (one DMA descriptor per grid step).
    w_ref: [Cout, K] bf16;  b_ref: [Cout, 1] f32;  o_ref: [Cout, tm] bf16.
    pool(relu(conv + b)) == relu(max_s(W @ cols_s) + b)  (ReLU monotone, b const).
    """
    w = w_ref[...]                       # bf16 resident block, no per-step cast

    def mm(s):                           # f32 MXU accumulation
        return jnp.dot(w, c_ref[s], preferred_element_type=jnp.float32)

    m = jnp.maximum(jnp.maximum(mm(0), mm(1)), jnp.maximum(mm(2), mm(3)))
    o_ref[...] = jnp.maximum(m + b_ref[...], 0.0).astype(o_ref.dtype)


def _mlp_kernel(x_ref, w1_ref, b1_ref, w2_ref, b2_ref, w3_ref, b3_ref, o_ref):
    """Fused fc1 -> ReLU -> fc2 -> ReLU -> fc3 on 128-padded widths."""
    def dot(a, w_ref):
        return jnp.dot(a, w_ref[...], preferred_element_type=jnp.float32)

    h = jnp.maximum(dot(x_ref[...], w1_ref) + b1_ref[...], 0.0)
    h = jnp.maximum(dot(h.astype(jnp.bfloat16), w2_ref) + b2_ref[...], 0.0)
    o_ref[...] = (dot(h.astype(jnp.bfloat16), w3_ref) + b3_ref[...]).astype(o_ref.dtype)


# ---------------------------------------------------------------------------
# Wrappers (im2col glue + pallas_call plumbing)
# ---------------------------------------------------------------------------
def conv_pool_relu(x_cnhw, w, b, *, max_lane_tile=4096):
    """x: [Cin, B, H, W] bf16 (CNHW); w: [Cout, Cin, k, k]; b: [Cout]
    -> [Cout, B, Hp, Wp] bf16, fused conv + bias + ReLU + maxpool 2x2.
    max_lane_tile=4096 keeps double-buffered bf16 cols ~<=10 MiB (v7x safe);
    v5e/v6e could raise it further."""
    Cout, Cin, k, _ = w.shape
    C, B, H, W = x_cnhw.shape
    assert C == Cin
    Ho, Wo = H - k + 1, W - k + 1
    assert Ho % 2 == 0 and Wo % 2 == 0, "MaxPool2d(2,2) needs even conv output"
    Hp, Wp = Ho // 2, Wo // 2
    K = Cin * k * k
    M = B * Hp * Wp

    tm = _pick_lane_tile(M, max_lane_tile)
    Mpad = _round_up(M, tm)

    # im2col restricted to each pooling offset; rows ordered (Cin, kh, kw) to
    # match torch weight.reshape(Cout, Cin*k*k).  Stays bf16 end-to-end.
    def cols_for(sh, sw):
        patches = jnp.stack(
            [x_cnhw[:, :, di + sh:di + sh + 2 * Hp:2, dj + sw:dj + sw + 2 * Wp:2]
             for di in range(k) for dj in range(k)],
            axis=1)                                   # [Cin, k*k, B, Hp, Wp]
        return patches.reshape(K, M)

    cols4 = jnp.stack([cols_for(0, 0), cols_for(0, 1),
                       cols_for(1, 0), cols_for(1, 1)], axis=0)   # [4, K, M] bf16
    if Mpad != M:
        cols4 = jnp.pad(cols4, ((0, 0), (0, 0), (0, Mpad - M)))

    w2 = w.reshape(Cout, K).astype(jnp.bfloat16)
    b2 = b.reshape(Cout, 1).astype(jnp.float32)

    out = pl.pallas_call(
        _conv_pool_kernel,
        out_shape=jax.ShapeDtypeStruct((Cout, Mpad), jnp.bfloat16),
        grid=(Mpad // tm,),
        in_specs=[pl.BlockSpec((4, K, tm), lambda i: (0, 0, i)),
                  pl.BlockSpec((Cout, K), lambda i: (0, 0)),
                  pl.BlockSpec((Cout, 1), lambda i: (0, 0))],
        out_specs=pl.BlockSpec((Cout, tm), lambda i: (0, i)),
        compiler_params=pltpu.CompilerParams(
            dimension_semantics=("parallel",),
            vmem_limit_bytes=32 * 1024 * 1024),
    )(cols4, w2, b2)
    # Drop the zero-padded lanes before reshaping back to CNHW.
    return out[:, :M].reshape(Cout, B, Hp, Wp)


_FC_PAD = 128  # pad 120/84/10-wide FC outputs to a full lane tile


def _pad2(a, rows, cols):
    return jnp.pad(a, ((0, rows - a.shape[0]), (0, cols - a.shape[1])))


def mlp_fused(x, params, *, max_row_tile=512):
    """x: [B, 400] -> [B, 10] f32; fc1/fc2/fc3 fused in one Pallas call."""
    x = x.astype(jnp.bfloat16)
    B, K = x.shape
    P = _FC_PAD
    w1 = _pad2(params["fc1_w"], K, P).astype(jnp.bfloat16)
    w2 = _pad2(params["fc2_w"], P, P).astype(jnp.bfloat16)
    w3 = _pad2(params["fc3_w"], P, P).astype(jnp.bfloat16)
    b1 = jnp.pad(params["fc1_b"], (0, P - params["fc1_b"].shape[0])).reshape(1, P)
    b2 = jnp.pad(params["fc2_b"], (0, P - params["fc2_b"].shape[0])).reshape(1, P)
    b3 = jnp.pad(params["fc3_b"], (0, P - params["fc3_b"].shape[0])).reshape(1, P)
    n_out = params["fc3_w"].shape[1]

    tb = B if B <= max_row_tile else max_row_tile
    full = lambda shape: pl.BlockSpec(shape, lambda i: (0, 0))
    out = pl.pallas_call(
        _mlp_kernel,
        out_shape=jax.ShapeDtypeStruct((B, P), jnp.float32),
        grid=(pl.cdiv(B, tb),),
        in_specs=[pl.BlockSpec((tb, K), lambda i: (i, 0)),
                  full(w1.shape), full(b1.shape),
                  full(w2.shape), full(b2.shape),
                  full(w3.shape), full(b3.shape)],
        out_specs=pl.BlockSpec((tb, P), lambda i: (i, 0)),
        compiler_params=pltpu.CompilerParams(
            dimension_semantics=("parallel",),
            vmem_limit_bytes=32 * 1024 * 1024),
    )(x, w1, b1, w2, b2, w3, b3)
    return out[:, :n_out]


# ---------------------------------------------------------------------------
# Parameters (deterministic init, PyTorch-default-style uniform bounds)
# ---------------------------------------------------------------------------
def init_params(key):
    def uni(k, shape, fan_in):
        bound = 1.0 / jnp.sqrt(jnp.float32(fan_in))
        return jax.random.uniform(k, shape, jnp.float32, -bound, bound)

    ks = jax.random.split(key, 10)
    return {
        # conv weights in PyTorch [Cout, Cin, kh, kw] layout
        "conv1_w": uni(ks[0], (6, 3, 5, 5), 3 * 5 * 5),
        "conv1_b": uni(ks[1], (6,), 3 * 5 * 5),
        "conv2_w": uni(ks[2], (16, 6, 5, 5), 6 * 5 * 5),
        "conv2_b": uni(ks[3], (16,), 6 * 5 * 5),
        # fc weights stored pre-transposed as [in, out]
        "fc1_w": uni(ks[4], (16 * 5 * 5, 120), 16 * 5 * 5),
        "fc1_b": uni(ks[5], (120,), 16 * 5 * 5),
        "fc2_w": uni(ks[6], (120, 84), 120),
        "fc2_b": uni(ks[7], (84,), 120),
        "fc3_w": uni(ks[8], (84, 10), 84),
        "fc3_b": uni(ks[9], (10,), 84),
    }


# ---------------------------------------------------------------------------
# Forward pass (matches torch Net.forward; MXU runs in bf16 with f32
# accumulation -- inference-grade, not bit-exact vs torch f32)
# ---------------------------------------------------------------------------
@jax.jit
def net_forward(x, params):
    x = x.transpose(1, 0, 2, 3).astype(jnp.bfloat16)              # NCHW -> CNHW, bf16
    x = conv_pool_relu(x, params["conv1_w"], params["conv1_b"])   # [6, B, 14, 14]
    x = conv_pool_relu(x, params["conv2_w"], params["conv2_b"])   # [16, B, 5, 5]
    B = x.shape[1]
    # TODO(synk): at large batch fold this layout change into the MLP kernel
    # (or permute fc1_w rows at init) to avoid one HBM round-trip.
    x = x.transpose(1, 0, 2, 3).reshape(B, 16 * 5 * 5)            # torch .view(-1, 400)
    return mlp_fused(x, params)                                   # [B, 10] f32


if __name__ == "__main__":
    key = jax.random.PRNGKey(0)
    k_x, k_p = jax.random.split(key)
    # CIFAR-style input implied by fc1 (16*5*5): [B, 3, 32, 32]
    x = jax.random.normal(k_x, (2, 3, 32, 32), dtype=jnp.float32)
    params = init_params(k_p)
    out = net_forward(x, params)
    out = jax.block_until_ready(out)
    assert out.shape == (2, 10) and out.dtype == jnp.float32
    print("KERNEL_OK")
</pallas_src>

<mosaic_0001>
module attributes {stable_mosaic.version = 11 : i64} {
  func.func @_conv_pool_kernel(%arg0: i32, %arg1: memref<4x75x256xbf16, #tpu.memory_space<vmem>>, %arg2: memref<6x75xbf16, #tpu.memory_space<vmem>>, %arg3: memref<6x1xf32, #tpu.memory_space<vmem>>, %arg4: memref<6x256xbf16, #tpu.memory_space<vmem>>) attributes {dimension_semantics = [#tpu.dimension_semantics<parallel>], iteration_bounds = array<i64: 2>, scalar_prefetch = 0 : i64, scratch_operands = 0 : i64, tpu.core_type = #tpu.core_type<tc>, window_params = [{transform_indices = @transform_0, window_bounds = array<i64: 4, 75, 256>}, {pipeline_mode = #tpu.pipeline_mode<synchronous>, transform_indices = @transform_1, window_bounds = array<i64: 6, 75>}, {pipeline_mode = #tpu.pipeline_mode<synchronous>, transform_indices = @transform_2, window_bounds = array<i64: 6, 1>}, {transform_indices = @transform_3, window_bounds = array<i64: 6, 256>}]} {
    %c0 = arith.constant 0 : index
    %c0_0 = arith.constant 0 : index
    %0 = vector.load %arg2[%c0, %c0_0] : memref<6x75xbf16, #tpu.memory_space<vmem>>, vector<6x75xbf16>
    %c0_1 = arith.constant 0 : index
    %c0_2 = arith.constant 0 : index
    %c0_3 = arith.constant 0 : index
    %1 = vector.load %arg1[%c0_1, %c0_2, %c0_3] : memref<4x75x256xbf16, #tpu.memory_space<vmem>>, vector<1x75x256xbf16>
    %2 = vector.shape_cast %1 : vector<1x75x256xbf16> to vector<75x256xbf16>
    %cst = arith.constant dense<0.000000e+00> : vector<6x256xf32>
    %3 = tpu.matmul %0, %2, %cst {dimension_numbers = #tpu.dot_dimension_numbers<[1], [0], [0], [1], [0, 0, 1, 1], [], []>} : vector<6x75xbf16>, vector<75x256xbf16>, vector<6x256xf32> -> vector<6x256xf32>
    %c1 = arith.constant 1 : index
    %c0_4 = arith.constant 0 : index
    %c0_5 = arith.constant 0 : index
    %4 = vector.load %arg1[%c1, %c0_4, %c0_5] : memref<4x75x256xbf16, #tpu.memory_space<vmem>>, vector<1x75x256xbf16>
    %5 = vector.shape_cast %4 : vector<1x75x256xbf16> to vector<75x256xbf16>
    %cst_6 = arith.constant dense<0.000000e+00> : vector<6x256xf32>
    %6 = tpu.matmul %0, %5, %cst_6 {dimension_numbers = #tpu.dot_dimension_numbers<[1], [0], [0], [1], [0, 0, 1, 1], [], []>} : vector<6x75xbf16>, vector<75x256xbf16>, vector<6x256xf32> -> vector<6x256xf32>
    %7 = arith.maximumf %3, %6 : vector<6x256xf32>
    %c2 = arith.constant 2 : index
    %c0_7 = arith.constant 0 : index
    %c0_8 = arith.constant 0 : index
    %8 = vector.load %arg1[%c2, %c0_7, %c0_8] : memref<4x75x256xbf16, #tpu.memory_space<vmem>>, vector<1x75x256xbf16>
    %9 = vector.shape_cast %8 : vector<1x75x256xbf16> to vector<75x256xbf16>
    %cst_9 = arith.constant dense<0.000000e+00> : vector<6x256xf32>
    %10 = tpu.matmul %0, %9, %cst_9 {dimension_numbers = #tpu.dot_dimension_numbers<[1], [0], [0], [1], [0, 0, 1, 1], [], []>} : vector<6x75xbf16>, vector<75x256xbf16>, vector<6x256xf32> -> vector<6x256xf32>
    %c3 = arith.constant 3 : index
    %c0_10 = arith.constant 0 : index
    %c0_11 = arith.constant 0 : index
    %11 = vector.load %arg1[%c3, %c0_10, %c0_11] : memref<4x75x256xbf16, #tpu.memory_space<vmem>>, vector<1x75x256xbf16>
    %12 = vector.shape_cast %11 : vector<1x75x256xbf16> to vector<75x256xbf16>
    %cst_12 = arith.constant dense<0.000000e+00> : vector<6x256xf32>
    %13 = tpu.matmul %0, %12, %cst_12 {dimension_numbers = #tpu.dot_dimension_numbers<[1], [0], [0], [1], [0, 0, 1, 1], [], []>} : vector<6x75xbf16>, vector<75x256xbf16>, vector<6x256xf32> -> vector<6x256xf32>
    %14 = arith.maximumf %10, %13 : vector<6x256xf32>
    %15 = arith.maximumf %7, %14 : vector<6x256xf32>
    %c0_13 = arith.constant 0 : index
    %c0_14 = arith.constant 0 : index
    %16 = vector.load %arg3[%c0_13, %c0_14] : memref<6x1xf32, #tpu.memory_space<vmem>>, vector<6x1xf32>
    %17 = vector.broadcast %16 : vector<6x1xf32> to vector<6x256xf32>
    %18 = arith.addf %15, %17 : vector<6x256xf32>
    %cst_15 = arith.constant 0.000000e+00 : f32
    %19 = vector.broadcast %cst_15 : f32 to vector<6x256xf32>
    %20 = arith.maximumf %18, %19 : vector<6x256xf32>
    %21 = arith.truncf %20 : vector<6x256xf32> to vector<6x256xbf16>
    %c0_16 = arith.constant 0 : index
    %c0_17 = arith.constant 0 : index
    %22 = vector.load %arg4[%c0_16, %c0_17] : memref<6x256xbf16, #tpu.memory_space<vmem>>, vector<6x256xbf16>
    tpu.vector_store %arg4[%c0_16, %c0_17], %21 {strides = array<i32>} : memref<6x256xbf16, #tpu.memory_space<vmem>>, vector<6x256xbf16>,
    return
  }
  func.func @transform_0(%arg0: i32) -> (i32, i32, i32) {
    %c0_i32 = arith.constant 0 : i32
    %c0_i32_0 = arith.constant 0 : i32
    %c0_i32_1 = arith.constant 0 : i32
    return %c0_i32, %c0_i32_0, %arg0 : i32, i32, i32
  }
  func.func @transform_1(%arg0: i32) -> (i32, i32) {
    %c0_i32 = arith.constant 0 : i32
    %c0_i32_0 = arith.constant 0 : i32
    %c0_i32_1 = arith.constant 0 : i32
    return %c0_i32, %c0_i32_0 : i32, i32
  }
  func.func @transform_2(%arg0: i32) -> (i32, i32) {
    %c0_i32 = arith.constant 0 : i32
    %c0_i32_0 = arith.constant 0 : i32
    %c0_i32_1 = arith.constant 0 : i32
    return %c0_i32, %c0_i32_0 : i32, i32
  }
  func.func @transform_3(%arg0: i32) -> (i32, i32) {
    %c0_i32 = arith.constant 0 : i32
    %c0_i32_0 = arith.constant 0 : i32
    return %c0_i32, %arg0 : i32, i32
  }
}

module attributes {stable_mosaic.version = 11 : i64} {
  func.func @_conv_pool_kernel(%arg0: i32, %arg1: memref<4x150x128xbf16, #tpu.memory_space<vmem>>, %arg2: memref<16x150xbf16, #tpu.memory_space<vmem>>, %arg3: memref<16x1xf32, #tpu.memory_space<vmem>>, %arg4: memref<16x128xbf16, #tpu.memory_space<vmem>>) attributes {dimension_semantics = [#tpu.dimension_semantics<parallel>], iteration_bounds = array<i64: 1>, scalar_prefetch = 0 : i64, scratch_operands = 0 : i64, tpu.core_type = #tpu.core_type<tc>, window_params = [{transform_indices = @transform_0, window_bounds = array<i64: 4, 150, 128>}, {pipeline_mode = #tpu.pipeline_mode<synchronous>, transform_indices = @transform_1, window_bounds = array<i64: 16, 150>}, {pipeline_mode = #tpu.pipeline_mode<synchronous>, transform_indices = @transform_2, window_bounds = array<i64: 16, 1>}, {transform_indices = @transform_3, window_bounds = array<i64: 16, 128>}]} {
    %c0 = arith.constant 0 : index
    %c0_0 = arith.constant 0 : index
    %0 = vector.load %arg2[%c0, %c0_0] : memref<16x150xbf16, #tpu.memory_space<vmem>>, vector<16x150xbf16>
    %c0_1 = arith.constant 0 : index
    %c0_2 = arith.constant 0 : index
    %c0_3 = arith.constant 0 : index
    %1 = vector.load %arg1[%c0_1, %c0_2, %c0_3] : memref<4x150x128xbf16, #tpu.memory_space<vmem>>, vector<1x150x128xbf16>
    %2 = vector.shape_cast %1 : vector<1x150x128xbf16> to vector<150x128xbf16>
    %cst = arith.constant dense<0.000000e+00> : vector<16x128xf32>
    %3 = tpu.matmul %0, %2, %cst {dimension_numbers = #tpu.dot_dimension_numbers<[1], [0], [0], [1], [0, 0, 1, 1], [], []>} : vector<16x150xbf16>, vector<150x128xbf16>, vector<16x128xf32> -> vector<16x128xf32>
    %c1 = arith.constant 1 : index
    %c0_4 = arith.constant 0 : index
    %c0_5 = arith.constant 0 : index
    %4 = vector.load %arg1[%c1, %c0_4, %c0_5] : memref<4x150x128xbf16, #tpu.memory_space<vmem>>, vector<1x150x128xbf16>
    %5 = vector.shape_cast %4 : vector<1x150x128xbf16> to vector<150x128xbf16>
    %cst_6 = arith.constant dense<0.000000e+00> : vector<16x128xf32>
    %6 = tpu.matmul %0, %5, %cst_6 {dimension_numbers = #tpu.dot_dimension_numbers<[1], [0], [0], [1], [0, 0, 1, 1], [], []>} : vector<16x150xbf16>, vector<150x128xbf16>, vector<16x128xf32> -> vector<16x128xf32>
    %7 = arith.maximumf %3, %6 : vector<16x128xf32>
    %c2 = arith.constant 2 : index
    %c0_7 = arith.constant 0 : index
    %c0_8 = arith.constant 0 : index
    %8 = vector.load %arg1[%c2, %c0_7, %c0_8] : memref<4x150x128xbf16, #tpu.memory_space<vmem>>, vector<1x150x128xbf16>
    %9 = vector.shape_cast %8 : vector<1x150x128xbf16> to vector<150x128xbf16>
    %cst_9 = arith.constant dense<0.000000e+00> : vector<16x128xf32>
    %10 = tpu.matmul %0, %9, %cst_9 {dimension_numbers = #tpu.dot_dimension_numbers<[1], [0], [0], [1], [0, 0, 1, 1], [], []>} : vector<16x150xbf16>, vector<150x128xbf16>, vector<16x128xf32> -> vector<16x128xf32>
    %c3 = arith.constant 3 : index
    %c0_10 = arith.constant 0 : index
    %c0_11 = arith.constant 0 : index
    %11 = vector.load %arg1[%c3, %c0_10, %c0_11] : memref<4x150x128xbf16, #tpu.memory_space<vmem>>, vector<1x150x128xbf16>
    %12 = vector.shape_cast %11 : vector<1x150x128xbf16> to vector<150x128xbf16>
    %cst_12 = arith.constant dense<0.000000e+00> : vector<16x128xf32>
    %13 = tpu.matmul %0, %12, %cst_12 {dimension_numbers = #tpu.dot_dimension_numbers<[1], [0], [0], [1], [0, 0, 1, 1], [], []>} : vector<16x150xbf16>, vector<150x128xbf16>, vector<16x128xf32> -> vector<16x128xf32>
    %14 = arith.maximumf %10, %13 : vector<16x128xf32>
    %15 = arith.maximumf %7, %14 : vector<16x128xf32>
    %c0_13 = arith.constant 0 : index
    %c0_14 = arith.constant 0 : index
    %16 = vector.load %arg3[%c0_13, %c0_14] : memref<16x1xf32, #tpu.memory_space<vmem>>, vector<16x1xf32>
    %17 = vector.broadcast %16 : vector<16x1xf32> to vector<16x128xf32>
    %18 = arith.addf %15, %17 : vector<16x128xf32>
    %cst_15 = arith.constant 0.000000e+00 : f32
    %19 = vector.broadcast %cst_15 : f32 to vector<16x128xf32>
    %20 = arith.maximumf %18, %19 : vector<16x128xf32>
    %21 = arith.truncf %20 : vector<16x128xf32> to vector<16x128xbf16>
    %c0_16 = arith.constant 0 : index
    %c0_17 = arith.constant 0 : index
    %22 = vector.load %arg4[%c0_16, %c0_17] : memref<16x128xbf16, #tpu.memory_space<vmem>>, vector<16x128xbf16>
    tpu.vector_store %arg4[%c0_16, %c0_17], %21 {strides = array<i32>} : memref<16x128xbf16, #tpu.memory_space<vmem>>, vector<16x128xbf16>,
    return
  }
  func.func @transform_0(%arg0: i32) -> (i32, i32, i32) {
    %c0_i32 = arith.constant 0 : i32
    %c0_i32_0 = arith.constant 0 : i32
    %c0_i32_1 = arith.constant 0 : i32
    return %c0_i32, %c0_i32_0, %arg0 : i32, i32, i32
  }
  func.func @transform_1(%arg0: i32) -> (i32, i32) {
    %c0_i32 = arith.constant 0 : i32
    %c0_i32_0 = arith.constant 0 : i32
    %c0_i32_1 = arith.constant 0 : i32
    return %c0_i32, %c0_i32_0 : i32, i32
  }
  func.func @transform_2(%arg0: i32) -> (i32, i32) {
    %c0_i32 = arith.constant 0 : i32
    %c0_i32_0 = arith.constant 0 : i32
    %c0_i32_1 = arith.constant 0 : i32
    return %c0_i32, %c0_i32_0 : i32, i32
  }
  func.func @transform_3(%arg0: i32) -> (i32, i32) {
    %c0_i32 = arith.constant 0 : i32
    %c0_i32_0 = arith.constant 0 : i32
    return %c0_i32, %arg0 : i32, i32
  }
}

module attributes {stable_mosaic.version = 11 : i64} {
  func.func @_mlp_kernel(%arg0: i32, %arg1: memref<2x400xbf16, #tpu.memory_space<vmem>>, %arg2: memref<400x128xbf16, #tpu.memory_space<vmem>>, %arg3: memref<1x128xf32, #tpu.memory_space<vmem>>, %arg4: memref<128x128xbf16, #tpu.memory_space<vmem>>, %arg5: memref<1x128xf32, #tpu.memory_space<vmem>>, %arg6: memref<128x128xbf16, #tpu.memory_space<vmem>>, %arg7: memref<1x128xf32, #tpu.memory_space<vmem>>, %arg8: memref<2x128xf32, #tpu.memory_space<vmem>>) attributes {dimension_semantics = [#tpu.dimension_semantics<parallel>], iteration_bounds = array<i64: 1>, scalar_prefetch = 0 : i64, scratch_operands = 0 : i64, tpu.core_type = #tpu.core_type<tc>, window_params = [{transform_indices = @transform_0, window_bounds = array<i64: 2, 400>}, {pipeline_mode = #tpu.pipeline_mode<synchronous>, transform_indices = @transform_1, window_bounds = array<i64: 400, 128>}, {pipeline_mode = #tpu.pipeline_mode<synchronous>, transform_indices = @transform_2, window_bounds = array<i64: 1, 128>}, {pipeline_mode = #tpu.pipeline_mode<synchronous>, transform_indices = @transform_3, window_bounds = array<i64: 128, 128>}, {pipeline_mode = #tpu.pipeline_mode<synchronous>, transform_indices = @transform_4, window_bounds = array<i64: 1, 128>}, {pipeline_mode = #tpu.pipeline_mode<synchronous>, transform_indices = @transform_5, window_bounds = array<i64: 128, 128>}, {pipeline_mode = #tpu.pipeline_mode<synchronous>, transform_indices = @transform_6, window_bounds = array<i64: 1, 128>}, {transform_indices = @transform_7, window_bounds = array<i64: 2, 128>}]} {
    %c0 = arith.constant 0 : index
    %c0_0 = arith.constant 0 : index
    %0 = vector.load %arg1[%c0, %c0_0] : memref<2x400xbf16, #tpu.memory_space<vmem>>, vector<2x400xbf16>
    %c0_1 = arith.constant 0 : index
    %c0_2 = arith.constant 0 : index
    %1 = vector.load %arg2[%c0_1, %c0_2] : memref<400x128xbf16, #tpu.memory_space<vmem>>, vector<400x128xbf16>
    %cst = arith.constant dense<0.000000e+00> : vector<2x128xf32>
    %2 = tpu.matmul %0, %1, %cst {dimension_numbers = #tpu.dot_dimension_numbers<[1], [0], [0], [1], [0, 0, 1, 1], [], []>} : vector<2x400xbf16>, vector<400x128xbf16>, vector<2x128xf32> -> vector<2x128xf32>
    %c0_3 = arith.constant 0 : index
    %c0_4 = arith.constant 0 : index
    %3 = vector.load %arg3[%c0_3, %c0_4] : memref<1x128xf32, #tpu.memory_space<vmem>>, vector<1x128xf32>
    %4 = vector.broadcast %3 : vector<1x128xf32> to vector<2x128xf32>
    %5 = arith.addf %2, %4 : vector<2x128xf32>
    %cst_5 = arith.constant 0.000000e+00 : f32
    %6 = vector.broadcast %cst_5 : f32 to vector<2x128xf32>
    %7 = arith.maximumf %5, %6 : vector<2x128xf32>
    %8 = arith.truncf %7 : vector<2x128xf32> to vector<2x128xbf16>
    %c0_6 = arith.constant 0 : index
    %c0_7 = arith.constant 0 : index
    %9 = vector.load %arg4[%c0_6, %c0_7] : memref<128x128xbf16, #tpu.memory_space<vmem>>, vector<128x128xbf16>
    %cst_8 = arith.constant dense<0.000000e+00> : vector<2x128xf32>
    %10 = tpu.matmul %8, %9, %cst_8 {dimension_numbers = #tpu.dot_dimension_numbers<[1], [0], [0], [1], [0, 0, 1, 1], [], []>} : vector<2x128xbf16>, vector<128x128xbf16>, vector<2x128xf32> -> vector<2x128xf32>
    %c0_9 = arith.constant 0 : index
    %c0_10 = arith.constant 0 : index
    %11 = vector.load %arg5[%c0_9, %c0_10] : memref<1x128xf32, #tpu.memory_space<vmem>>, vector<1x128xf32>
    %12 = vector.broadcast %11 : vector<1x128xf32> to vector<2x128xf32>
    %13 = arith.addf %10, %12 : vector<2x128xf32>
    %cst_11 = arith.constant 0.000000e+00 : f32
    %14 = vector.broadcast %cst_11 : f32 to vector<2x128xf32>
    %15 = arith.maximumf %13, %14 : vector<2x128xf32>
    %16 = arith.truncf %15 : vector<2x128xf32> to vector<2x128xbf16>
    %c0_12 = arith.constant 0 : index
    %c0_13 = arith.constant 0 : index
    %17 = vector.load %arg6[%c0_12, %c0_13] : memref<128x128xbf16, #tpu.memory_space<vmem>>, vector<128x128xbf16>
    %cst_14 = arith.constant dense<0.000000e+00> : vector<2x128xf32>
    %18 = tpu.matmul %16, %17, %cst_14 {dimension_numbers = #tpu.dot_dimension_numbers<[1], [0], [0], [1], [0, 0, 1, 1], [], []>} : vector<2x128xbf16>, vector<128x128xbf16>, vector<2x128xf32> -> vector<2x128xf32>
    %c0_15 = arith.constant 0 : index
    %c0_16 = arith.constant 0 : index
    %19 = vector.load %arg7[%c0_15, %c0_16] : memref<1x128xf32, #tpu.memory_space<vmem>>, vector<1x128xf32>
    %20 = vector.broadcast %19 : vector<1x128xf32> to vector<2x128xf32>
    %21 = arith.addf %18, %20 : vector<2x128xf32>
    %c0_17 = arith.constant 0 : index
    %c0_18 = arith.constant 0 : index
    %22 = vector.load %arg8[%c0_17, %c0_18] : memref<2x128xf32, #tpu.memory_space<vmem>>, vector<2x128xf32>
    tpu.vector_store %arg8[%c0_17, %c0_18], %21 {strides = array<i32>} : memref<2x128xf32, #tpu.memory_space<vmem>>, vector<2x128xf32>,
    return
  }
  func.func @transform_0(%arg0: i32) -> (i32, i32) {
    %c0_i32 = arith.constant 0 : i32
    %c0_i32_0 = arith.constant 0 : i32
    return %arg0, %c0_i32 : i32, i32
  }
  func.func @transform_1(%arg0: i32) -> (i32, i32) {
    %c0_i32 = arith.constant 0 : i32
    %c0_i32_0 = arith.constant 0 : i32
    %c0_i32_1 = arith.constant 0 : i32
    return %c0_i32, %c0_i32_0 : i32, i32
  }
  func.func @transform_2(%arg0: i32) -> (i32, i32) {
    %c0_i32 = arith.constant 0 : i32
    %c0_i32_0 = arith.constant 0 : i32
    %c0_i32_1 = arith.constant 0 : i32
    return %c0_i32, %c0_i32_0 : i32, i32
  }
  func.func @transform_3(%arg0: i32) -> (i32, i32) {
    %c0_i32 = arith.constant 0 : i32
    %c0_i32_0 = arith.constant 0 : i32
    %c0_i32_1 = arith.constant 0 : i32
    return %c0_i32, %c0_i32_0 : i32, i32
  }
  func.func @transform_4(%arg0: i32) -> (i32, i32) {
    %c0_i32 = arith.constant 0 : i32
    %c0_i32_0 = arith.constant 0 : i32
    %c0_i32_1 = arith.constant 0 : i32
    return %c0_i32, %c0_i32_0 : i32, i32
  }
  func.func @transform_5(%arg0: i32) -> (i32, i32) {
    %c0_i32 = arith.constant 0 : i32
    %c0_i32_0 = arith.constant 0 : i32
    %c0_i32_1 = arith.constant 0 : i32
    return %c0_i32, %c0_i32_0 : i32, i32
  }
  func.func @transform_6(%arg0: i32) -> (i32, i32) {
    %c0_i32 = arith.constant 0 : i32
    %c0_i32_0 = arith.constant 0 : i32
    %c0_i32_1 = arith.constant 0 : i32
    return %c0_i32, %c0_i32_0 : i32, i32
  }
  func.func @transform_7(%arg0: i32) -> (i32, i32) {
    %c0_i32 = arith.constant 0 : i32
    %c0_i32_0 = arith.constant 0 : i32
    return %arg0, %c0_i32 : i32, i32
  }
}

</mosaic_0001>

<bundles_post_ra>
// kernel: net_forward.3
= control target key start
LH: loop header
LB: loop body
LE: loop exit
PB: predicated region body
PF: predicated region fallthrough
CT: control target
= control target key end

     0   :  { %s1108_s12 = smov 0   ;;  %s1110_s13 = smov 0   ;;  %s1311_s0 = inlined_call_operand.vmem [shape: bf16[4,75,512], index: 0, kind: input, shape index: {}]   ;;  %s1312_s1 = inlined_call_operand.vmem [shape: bf16[6,75], index: 1, kind: input, shape index: {}]   ;;  %s1313_s2 = inlined_call_operand.vmem [shape: f32[6,1], index: 2, kind: input, shape index: {}]   ;;  %s1314_s3 = inlined_call_operand.vmem [shape: bf16[6,512], index: 3, kind: output, shape index: {}]  }
   0x1   :  { %s1112_s14 = smov 0  }
   0x2 LB: > { %s885_s15 = sadd.s32 4294967295, %s1084_s14   ;;  %s1125_s16 = sadd.s32 1, %s1084_s14   ;;  %s1084_s14 = sphi %s1112_s14, %s1317_s14   ;;  %s1080_s13 = sphi %s1110_s13, %s1316_s13   ;;  %s1076_s12 = sphi %s1108_s12, %s1315_s12  }
   0x3   : > { %s17_s17 = ssub.s32 %s1084_s14, %s1125_s16  ;;  %s20_s18 = sadd.s32 1, %s1080_s13 }
   0x4   : > { %p18_p0 = scmp.eq.s32.totalorder %s17_s17, 0  ;;  %p27_p1 = scmp.ne.s32.totalorder %s1080_s13, %s1076_s12 }
   0x5   : > { %p28_p2 = scmp.eq.s32.totalorder %s1084_s14, 0  ;;  %p888_p4 = scmp.ge.s32.totalorder %s1084_s14, 2 }
   0x6   : > { %s1134_s19 = scalar_select %p18_p0, %s1080_s13, %s20_s18  }
   0x7   : > { %p29_p3 = por %p28_p2, %p27_p1  ;;  %127 = sbr.rel (%p888_p4) target bundleno = 36 (0x24), region = 24 }
   0xc   : > { %130 = sbr.rel (!%p29_p3) target bundleno = 36 (0x24), region = 28  ;;  %s132_s20 = sand.u32 (%p29_p3), 1, %s1080_s13  }
   0xd   : > { %s971_s21 = sshll.u32 (%p29_p3), %s1084_s14, 3  ;;  %s973_s22 = smul.u32 (%p29_p3), 320, %s132_s20 }
   0xe   : > { %s1142_s25 = scalar_lea.vmem (%p29_p3), %s1311_s0, %s971_s21 }
   0xf   : > { %v244_v0 = vld [vmem:[%s1142_s25] sm:$0xff] (%p29_p3)  ;;  %v246_v1 = vld [vmem:[%s1142_s25 + $0x10] sm:$0xff] (%p29_p3)  ;;  %s1150_s26 = scalar_lea.vmem (%p29_p3), [#allocation2], %s973_s22 }
  0x10   : > { %v248_v2 = vld [vmem:[%s1142_s25 + $0x20] sm:$0xff] (%p29_p3)  ;;  %v250_v3 = vld [vmem:[%s1142_s25 + $0x30] sm:$0xff] (%p29_p3)  ;;  %245 = vst [vmem:[%s1150_s26] sm:$0xff] (%p29_p3), %v244_v0  ;;  %247 = vst [vmem:[%s1150_s26 + $0x8] sm:$0xff] (%p29_p3), %v246_v1 }
  0x11   : > { %v252_v4 = vld [vmem:[%s1142_s25 + $0x40] sm:$0xff]  ;;  %v254_v5 = vld [vmem:[%s1142_s25 + $0x50] sm:$0xff]  ;;  %249 = vst [vmem:[%s1150_s26 + $0x10] sm:$0xff] %v248_v2  ;;  %251 = vst [vmem:[%s1150_s26 + $0x18] sm:$0xff] %v250_v3 }
  0x12   : > { %253 = vst [vmem:[%s1150_s26 + $0x20] sm:$0xff] %v252_v4  ;;  %255 = vst [vmem:[%s1150_s26 + $0x28] sm:$0xff] %v254_v5  ;;  %v256_v6 = vld [vmem:[%s1142_s25 + $0x60] sm:$0xff]  ;;  %v258_v7 = vld [vmem:[%s1142_s25 + $0x70] sm:$0xff] }
  0x13   : > { %v260_v8 = vld [vmem:[%s1142_s25 + $0x80] sm:$0xff]  ;;  %257 = vst [vmem:[%s1150_s26 + $0x30] sm:$0xff] %v256_v6  ;;  %259 = vst [vmem:[%s1150_s26 + $0x38] sm:$0xff] %v258_v7  ;;  %v262_v9 = vld [vmem:[%s1142_s25 + $0x90] sm:$0xff] }
  0x14   : > { %261 = vst [vmem:[%s1150_s26 + $0x40] sm:$0xff] %v260_v8  ;;  %v264_v10 = vld [vmem:[%s1142_s25 + $0xa0] sm:$0xff]  ;;  %v266_v11 = vld [vmem:[%s1142_s25 + $0xb0] sm:$0xff]  ;;  %263 = vst [vmem:[%s1150_s26 + $0x48] sm:$0xff] %v262_v9 }
  0x15   : > { %265 = vst [vmem:[%s1150_s26 + $0x50] sm:$0xff] %v264_v10  ;;  %267 = vst [vmem:[%s1150_s26 + $0x58] sm:$0xff] %v266_v11  ;;  %v268_v12 = vld [vmem:[%s1142_s25 + $0xc0] sm:$0xff]  ;;  %v270_v13 = vld [vmem:[%s1142_s25 + $0xd0] sm:$0xff] }
  0x16   : > { %v272_v14 = vld [vmem:[%s1142_s25 + $0xe0] sm:$0xff]  ;;  %269 = vst [vmem:[%s1150_s26 + $0x60] sm:$0xff] %v268_v12  ;;  %271 = vst [vmem:[%s1150_s26 + $0x68] sm:$0xff] %v270_v13  ;;  %v274_v15 = vld [vmem:[%s1142_s25 + $0xf0] sm:$0xff] }
  0x17   : > { %273 = vst [vmem:[%s1150_s26 + $0x70] sm:$0xff] %v272_v14  ;;  %v276_v16 = vld [vmem:[%s1142_s25 + $0x100] sm:$0xff]  ;;  %v278_v17 = vld [vmem:[%s1142_s25 + $0x110] sm:$0xff]  ;;  %275 = vst [vmem:[%s1150_s26 + $0x78] sm:$0xff] %v274_v15 }
  0x18   : > { %277 = vst [vmem:[%s1150_s26 + $0x80] sm:$0xff] %v276_v16  ;;  %279 = vst [vmem:[%s1150_s26 + $0x88] sm:$0xff] %v278_v17  ;;  %v280_v18 = vld [vmem:[%s1142_s25 + $0x120] sm:$0xff]  ;;  %v282_v19 = vld [vmem:[%s1142_s25 + $0x130] sm:$0xff] }
  0x19   : > { %v284_v20 = vld [vmem:[%s1142_s25 + $0x140] sm:$0xff]  ;;  %281 = vst [vmem:[%s1150_s26 + $0x90] sm:$0xff] %v280_v18  ;;  %283 = vst [vmem:[%s1150_s26 + $0x98] sm:$0xff] %v282_v19  ;;  %v286_v21 = vld [vmem:[%s1142_s25 + $0x150] sm:$0xff] }
  0x1a   : > { %285 = vst [vmem:[%s1150_s26 + $0xa0] sm:$0xff] %v284_v20  ;;  %v288_v22 = vld [vmem:[%s1142_s25 + $0x160] sm:$0xff]  ;;  %v290_v23 = vld [vmem:[%s1142_s25 + $0x170] sm:$0xff]  ;;  %287 = vst [vmem:[%s1150_s26 + $0xa8] sm:$0xff] %v286_v21 }
  0x1b   : > { %289 = vst [vmem:[%s1150_s26 + $0xb0] sm:$0xff] %v288_v22  ;;  %291 = vst [vmem:[%s1150_s26 + $0xb8] sm:$0xff] %v290_v23  ;;  %v292_v24 = vld [vmem:[%s1142_s25 + $0x180] sm:$0xff]  ;;  %v294_v25 = vld [vmem:[%s1142_s25 + $0x190] sm:$0xff] }
  0x1c   : > { %v296_v26 = vld [vmem:[%s1142_s25 + $0x1a0] sm:$0xff]  ;;  %293 = vst [vmem:[%s1150_s26 + $0xc0] sm:$0xff] %v292_v24  ;;  %295 = vst [vmem:[%s1150_s26 + $0xc8] sm:$0xff] %v294_v25  ;;  %v298_v27 = vld [vmem:[%s1142_s25 + $0x1b0] sm:$0xff] }
  0x1d   : > { %297 = vst [vmem:[%s1150_s26 + $0xd0] sm:$0xff] %v296_v26  ;;  %v300_v28 = vld [vmem:[%s1142_s25 + $0x1c0] sm:$0xff]  ;;  %v302_v29 = vld [vmem:[%s1142_s25 + $0x1d0] sm:$0xff]  ;;  %299 = vst [vmem:[%s1150_s26 + $0xd8] sm:$0xff] %v298_v27 }
  0x1e   : > { %301 = vst [vmem:[%s1150_s26 + $0xe0] sm:$0xff] %v300_v28  ;;  %303 = vst [vmem:[%s1150_s26 + $0xe8] sm:$0xff] %v302_v29  ;;  %v304_v30 = vld [vmem:[%s1142_s25 + $0x1e0] sm:$0xff]  ;;  %v306_v31 = vld [vmem:[%s1142_s25 + $0x1f0] sm:$0xff] }
  0x1f   : > { %v308_v32 = vld [vmem:[%s1142_s25 + $0x200] sm:$0xff]  ;;  %305 = vst [vmem:[%s1150_s26 + $0xf0] sm:$0xff] %v304_v30  ;;  %307 = vst [vmem:[%s1150_s26 + $0xf8] sm:$0xff] %v306_v31  ;;  %v310_v33 = vld [vmem:[%s1142_s25 + $0x210] sm:$0xff] }
  0x20   : > { %309 = vst [vmem:[%s1150_s26 + $0x100] sm:$0xff] %v308_v32  ;;  %v312_v34 = vld [vmem:[%s1142_s25 + $0x220] sm:$0xff]  ;;  %v314_v35 = vld [vmem:[%s1142_s25 + $0x230] sm:$0xff]  ;;  %311 = vst [vmem:[%s1150_s26 + $0x108] sm:$0xff] %v310_v33 }
  0x21   : > { %313 = vst [vmem:[%s1150_s26 + $0x110] sm:$0xff] %v312_v34  ;;  %315 = vst [vmem:[%s1150_s26 + $0x118] sm:$0xff] %v314_v35  ;;  %v316_v36 = vld [vmem:[%s1142_s25 + $0x240] sm:$0xff]  ;;  %v318_v37 = vld [vmem:[%s1142_s25 + $0x250] sm:$0xff] }
  0x22   : > { %v320_v38 = vld [vmem:[%s1142_s25 + $0x260] sm:$0xff]  ;;  %317 = vst [vmem:[%s1150_s26 + $0x120] sm:$0xff] %v316_v36  ;;  %319 = vst [vmem:[%s1150_s26 + $0x128] sm:$0xff] %v318_v37  ;;  %v322_v39 = vld [vmem:[%s1142_s25 + $0x270] sm:$0xff] }
  0x23   : > { %321 = vst [vmem:[%s1150_s26 + $0x130] sm:$0xff] %v320_v38  ;;  %323 = vst [vmem:[%s1150_s26 + $0x138] sm:$0xff] %v322_v39 }
  0x24 PF: > { %p891_p5 = scmp.ge.s32.totalorder %s1084_s14, 1  ;;  %p328_p6 = scmp.lt.s32.totalorder %s1084_s14, 3 }
  0x26   : > { %p329_p7 = pnand %p891_p5, %p328_p6 }
  0x27   : > { %s335_s27 = sand.u32 (!%p329_p7), 1, %s1076_s12   ;;  %s892_s7 = sshll.u32 (!%p329_p7), %s885_s15, 1 }
  0x28   : > { %332 = sbr.rel (%p329_p7) target bundleno = 296 (0x128), region = 66  ;;  %p360_p8 = scmp.lt.s32.totalorder (!%p329_p7), %s892_s7, 3 }
  0x29   : > { %s974_s28 = smul.u32 (!%p329_p7), 320, %s335_s27 }
  0x2b   : > { %s1237_s4 = scalar_lea.vmem (!%p329_p7), [#allocation2], %s974_s28 }
  0x2d   : > { %vm429_vm0 = vcmask 1044480   ;;  %vm430_vm1 = vcmask 1045504   ;;  %v1086_v40 = vmov 65535   ;;  %v1087_v42 = vmov 0   ;;  %v804_v43 = vld [vmem:[%s1313_s2] sm:$0x3f] }
  0x2e   : > { %v431_v41 = vsel %vm429_vm0, 4294967295, %v1086_v40  ;;  %471 = vmatprep.mubr.bf16.mxu0 %v1087_v42  ;;  %577 = vmatprep.mubr.bf16.mxu1 %v1087_v42  ;;  %v1002_v45 = vld [vmem:[%s1237_s4 + $0x44] ss:$8 sps:$4 sm:$0x3f]   ;;  %v1008_v51 = vld [vmem:[%s1237_s4 + $0x34] ss:$8 sps:$4 sm:$0xff]  }
  0x2f   : > { %1001 = vset.pattern.permute.xlu0 %v1087_v42  ;;  %v1235_v44 = vsel %vm430_vm1, %v431_v41, 0  ;;  %v1004_v46 = vld [vmem:[%s1237_s4 + $0x94] ss:$8 sps:$4 sm:$0x3f]   ;;  %v1010_v54 = vld [vmem:[%s1237_s4 + $0x84] ss:$8 sps:$4 sm:$0xff]  }
  0x30   : > { %807 = vperm.xlu0 %1001, %v804_v43   ;;  %v437_v47 = vand.u32 %v1002_v45, %v1235_v44  ;;  %v1006_v48 = vld [vmem:[%s1237_s4 + $0x40] ss:$8 sps:$4 sm:$0x3f]   ;;  %v1007_v49 = vld [vmem:[%s1237_s4 + $0x90] ss:$8 sps:$4 sm:$0x3f]   ;;  %v543_v50 = vand.u32 %v1004_v46, %v1235_v44 }
  0x31   : > { %v434_v52 = vand.u32 %v1006_v48, %v1235_v44  ;;  %v540_v53 = vand.u32 %v1007_v49, %v1235_v44  ;;  %v1012_v55 = vld [vmem:[%s1237_s4 + $0x30] ss:$8 sps:$4 sm:$0xff]   ;;  %v1013_v56 = vld [vmem:[%s1237_s4 + $0x80] ss:$8 sps:$4 sm:$0xff]   ;;  %v1014_v57 = vld [vmem:[%s1237_s4 + $0x24] ss:$8 sps:$4 sm:$0xff]  }
  0x32   : > { %445 = vmatprep.subr.bf16.mxu0 %v437_v47  ;;  %551 = vmatprep.subr.bf16.mxu1 %v543_v50  ;;  %v1016_v58 = vld [vmem:[%s1237_s4 + $0x74] ss:$8 sps:$4 sm:$0xff]   ;;  %v1018_v59 = vld [vmem:[%s1237_s4 + $0x20] ss:$8 sps:$4 sm:$0xff]   ;;  %v1019_v60 = vld [vmem:[%s1237_s4 + $0x70] ss:$8 sps:$4 sm:$0xff]  }
  0x33   : > { %446 = vmatpush1.bf16.msra.mxu0 %v434_v52  ;;  %552 = vmatpush1.bf16.msra.mxu1 %v540_v53  ;;  %v1020_v61 = vld [vmem:[%s1237_s4 + $0x14] ss:$8 sps:$4 sm:$0xff]   ;;  %v1022_v62 = vld [vmem:[%s1237_s4 + $0x64] ss:$8 sps:$4 sm:$0xff]   ;;  %v1024_v63 = vld [vmem:[%s1237_s4 + $0x10] ss:$8 sps:$4 sm:$0xff]  }
  0x34   : > { %447 = vmatprep.subr.bf16.mxu0 %v1008_v51  ;;  %553 = vmatprep.subr.bf16.mxu1 %v1010_v54  ;;  %v1025_v0 = vld [vmem:[%s1237_s4 + $0x60] ss:$8 sps:$4 sm:$0xff]   ;;  %v1026_v1 = vld [vmem:[%s1237_s4 + $0x4] ss:$8 sps:$4 sm:$0xff]   ;;  %v1028_v2 = vld [vmem:[%s1237_s4 + $0x54] ss:$8 sps:$4 sm:$0xff]  }
  0x35   : > { %v1034_v3 = vld [vmem:[%s1237_s4 + $0xe4] ss:$8 sps:$4 sm:$0x3f]   ;;  %v1030_v4 = vld [vmem:[%s1237_s4] ss:$8 sps:$4 sm:$0xff]   ;;  %vm425_vm2 = vcmask 613376  }
  0x36   : > { %v1037_v5 = vld [vmem:[%s1237_s4 + $0x134] ss:$8 sps:$4 sm:$0x3f]   ;;  %v1031_v6 = vld [vmem:[%s1237_s4 + $0x50] ss:$8 sps:$4 sm:$0xff]   ;;  %v651_v9 = vand.u32 %v1034_v3, %v1235_v44  ;;  %s1319_s7 = smov (!%p360_p8, %s892_s7), 3 }
  0x37   : > { %448 = vmatpush1.bf16.msra.mxu0 %v1012_v55  ;;  %554 = vmatpush1.bf16.msra.mxu1 %v1013_v56  ;;  %v1032_v7 = vld [vmem:[%s1237_s4 + $0xe0] ss:$8 sps:$4 sm:$0x3f]   ;;  %v1035_v8 = vld [vmem:[%s1237_s4 + $0x130] ss:$8 sps:$4 sm:$0x3f]   ;;  %v757_v10 = vand.u32 %v1037_v5, %v1235_v44 }
  0x38   : > { %449 = vmatprep.subr.bf16.mxu0 %v1014_v57  ;;  %555 = vmatprep.subr.bf16.mxu1 %v1016_v58  ;;  %v366_v11 = vld [vmem:[%s1312_s1] sm:$0x7]  ;;  %v648_v12 = vand.u32 %v1032_v7, %v1235_v44  ;;  %v754_v13 = vand.u32 %v1035_v8, %v1235_v44  ;;  %v1040_v14 = vld [vmem:[%s1237_s4 + $0xd4] ss:$8 sps:$4 sm:$0xff]   ;;  %v1043_v15 = vld [vmem:[%s1237_s4 + $0x124] ss:$8 sps:$4 sm:$0xff]  }
  0x39   : > { %v1038_v16 = vld [vmem:[%s1237_s4 + $0xd0] ss:$8 sps:$4 sm:$0xff]   ;;  %v1041_v17 = vld [vmem:[%s1237_s4 + $0x120] ss:$8 sps:$4 sm:$0xff]   ;;  %v1046_v18 = vld [vmem:[%s1237_s4 + $0xc4] ss:$8 sps:$4 sm:$0xff]  }
  0x3a   : > { %v1049_v19 = vld [vmem:[%s1237_s4 + $0x114] ss:$8 sps:$4 sm:$0xff]   ;;  %v1044_v20 = vld [vmem:[%s1237_s4 + $0xc0] ss:$8 sps:$4 sm:$0xff]   ;;  %v1047_v21 = vld [vmem:[%s1237_s4 + $0x110] ss:$8 sps:$4 sm:$0xff]  }
  0x3b   : > { %450 = vmatpush1.bf16.msra.mxu0 %v1018_v59  ;;  %556 = vmatpush1.bf16.msra.mxu1 %v1019_v60  ;;  %v1052_v22 = vld [vmem:[%s1237_s4 + $0xb4] ss:$8 sps:$4 sm:$0xff]   ;;  %v1055_v23 = vld [vmem:[%s1237_s4 + $0x104] ss:$8 sps:$4 sm:$0xff]   ;;  %v1050_v24 = vld [vmem:[%s1237_s4 + $0xb0] ss:$8 sps:$4 sm:$0xff]  }
  0x3c   : > { %451 = vmatprep.subr.bf16.mxu0 %v1020_v61  ;;  %557 = vmatprep.subr.bf16.mxu1 %v1022_v62  ;;  %v1053_v25 = vld [vmem:[%s1237_s4 + $0x100] ss:$8 sps:$4 sm:$0xff]   ;;  %v1058_v26 = vld [vmem:[%s1237_s4 + $0xa4] ss:$8 sps:$4 sm:$0xff]   ;;  %v1061_v27 = vld [vmem:[%s1237_s4 + $0xf4] ss:$8 sps:$4 sm:$0xff]  }
  0x3d   : > { %v1056_v28 = vld [vmem:[%s1237_s4 + $0xa0] ss:$8 sps:$4 sm:$0xff]   ;;  %v1059_v29 = vld [vmem:[%s1237_s4 + $0xf0] ss:$8 sps:$4 sm:$0xff]   ;;  %s893_s8 = sshll.u32 %s1319_s7, 2 }
  0x3e   : > { %s363_s11 = scalar_lea.vmem %s1314_s3, %s893_s8 }
  0x3f   : > { %452 = vmatpush1.bf16.msra.mxu0 %v1024_v63  ;;  %558 = vmatpush1.bf16.msra.mxu1 %v1025_v0 }
  0x40   : > { %453 = vmatprep.subr.bf16.mxu0 %v1026_v1  ;;  %559 = vmatprep.subr.bf16.mxu1 %v1028_v2 }
  0x43   : > { %454 = vmatpush1.bf16.msra.mxu0 %v1030_v4  ;;  %560 = vmatpush1.bf16.msra.mxu1 %v1031_v6 }
  0x44   : > { %659 = vmatprep.subr.bf16.mxu0 %v651_v9  ;;  %765 = vmatprep.subr.bf16.mxu1 %v757_v10 }
  0x46   : > { %904 = vmatmul.mubr.msk.bf16.vlgmr.msra.gmra.mxu0 %vm425_vm2, %v366_v11  ;;  %925 = vmatmul.mubr.msk.bf16.vlgmr.msra.gmra.mxu1 %vm425_vm2, %v366_v11 }
  0x47   : > { %660 = vmatpush1.bf16.msra.mxu0 %v648_v12  ;;  %766 = vmatpush1.bf16.msra.mxu1 %v754_v13 }
  0x48   : > { %661 = vmatprep.subr.bf16.mxu0 %v1040_v14  ;;  %767 = vmatprep.subr.bf16.mxu1 %v1043_v15 }
  0x49   : > { %685 = vmatprep.mubr.bf16.mxu0 %v1087_v42  ;;  %791 = vmatprep.mubr.bf16.mxu1 %v1087_v42 }
  0x4b   : > { %662 = vmatpush1.bf16.msra.mxu0 %v1038_v16  ;;  %768 = vmatpush1.bf16.msra.mxu1 %v1041_v17 }
  0x4c   : > { %663 = vmatprep.subr.bf16.mxu0 %v1046_v18  ;;  %769 = vmatprep.subr.bf16.mxu1 %v1049_v19 }
  0x4f   : > { %664 = vmatpush1.bf16.msra.mxu0 %v1044_v20  ;;  %770 = vmatpush1.bf16.msra.mxu1 %v1047_v21 }
  0x50   : > { %665 = vmatprep.subr.bf16.mxu0 %v1052_v22  ;;  %771 = vmatprep.subr.bf16.mxu1 %v1055_v23 }
  0x53   : > { %666 = vmatpush1.bf16.msra.mxu0 %v1050_v24  ;;  %772 = vmatpush1.bf16.msra.mxu1 %v1053_v25 }
  0x54   : > { %667 = vmatprep.subr.bf16.mxu0 %v1058_v26  ;;  %773 = vmatprep.subr.bf16.mxu1 %v1061_v27 }
  0x57   : > { %668 = vmatpush1.bf16.msra.mxu0 %v1056_v28  ;;  %774 = vmatpush1.bf16.msra.mxu1 %v1059_v29 }
  0x5a   : > { %946 = vmatmul.mubr.msk.bf16.vlgmr.msra.gmra.mxu0 %vm425_vm2, %v366_v11  ;;  %967 = vmatmul.mubr.msk.bf16.vlgmr.msra.gmra.mxu1 %vm425_vm2, %v366_v11 }
  0xab   : > { %v808_v42 = vpop.permute.xlu0 %807 }
 0x106   : > { %v473_v30 = vpop.f32.mrf.mxu0  ;;  %v579_v31 = vpop.f32.mrf.mxu1 }
 0x107   : > { %v586_v40 = vmax.f32 %v473_v30, %v579_v31 }
 0x108   : > { %v475_v32 = vpop.f32.mrf.mxu0  ;;  %v581_v33 = vpop.f32.mrf.mxu1 }
 0x109   : > { %v587_v45 = vmax.f32 %v475_v32, %v581_v33 }
 0x10a   : > { %v477_v34 = vpop.f32.mrf.mxu0  ;;  %v583_v35 = vpop.f32.mrf.mxu1 }
 0x10c   : > { %v478_v36 = vpop.f32.mrf.mxu0  ;;  %v584_v37 = vpop.f32.mrf.mxu1 }
 0x11a   : > { %v687_v38 = vpop.f32.mrf.mxu0  ;;  %v793_v39 = vpop.f32.mrf.mxu1 }
 0x11b   : > { %v800_v41 = vmax.f32 %v687_v38, %v793_v39 }
 0x11c   : > { %v689_v43 = vpop.f32.mrf.mxu0  ;;  %v795_v44 = vpop.f32.mrf.mxu1 }
 0x11d   : > { %v801_v46 = vmax.f32 %v689_v43, %v795_v44  ;;  %v802_v47 = vmax.f32 %v586_v40, %v800_v41 }
 0x11e   : > { %v691_v48 = vpop.f32.mrf.mxu0  ;;  %v797_v49 = vpop.f32.mrf.mxu1 }
 0x11f   : > { %v803_v50 = vmax.f32 %v587_v45, %v801_v46  ;;  %v810_v51 = vadd.f32 %v808_v42, %v802_v47 }
 0x120   : > { %v692_v52 = vpop.f32.mrf.mxu0  ;;  %v798_v53 = vpop.f32.mrf.mxu1 }
 0x121   : > { %v811_v54 = vadd.f32 %v808_v42, %v803_v50  ;;  %v812_v55 = vmax.f32 %v810_v51, 0.0 }
 0x123   : > { %v813_v56 = vmax.f32 %v811_v54, 0.0 }
 0x125   : > { %v972_v57 = vpack.c.bf16 %v813_v56, %v812_v55 }
 0x127   : > { %822 = vst [vmem:[%s363_s11] sm:$0x77] %v972_v57 }
 0x128 PF: > { %p10_p9 = scmp.ge.s32.totalorder %s1125_s16, 4   ;;  %s1315_s12 = smov %s1080_s13 }
 0x129   : > { %s1316_s13 = smov %s1134_s19  ;;  %s1317_s14 = smov %s1125_s16 }
 0x12a   :  { %12 = sbr.rel (!%p10_p9) target bundleno = 2 (0x2), region = 108 }

// kernel: net_forward.4
= control target key start
LH: loop header
LB: loop body
LE: loop exit
PB: predicated region body
PF: predicated region fallthrough
CT: control target
= control target key end

     0   :  { %v707_v0 = vmov 0   ;;  %vm102_vm0 = vcmask 179200   ;;  %vm106_vm1 = vcmask 1042432   ;;  %s918_s0 = inlined_call_operand.vmem [shape: bf16[4,150,128], index: 0, kind: input, shape index: {}]   ;;  %s919_s1 = inlined_call_operand.vmem [shape: bf16[16,150], index: 1, kind: input, shape index: {}]   ;;  %s920_s2 = inlined_call_operand.vmem [shape: f32[16,1], index: 2, kind: input, shape index: {}]   ;;  %s921_s3 = inlined_call_operand.vmem [shape: bf16[16,128], index: 3, kind: output, shape index: {}]  }
   0x1   :  { %110 = vmatprep.subr.bf16.mxu0 %v707_v0  ;;  %231 = vmatprep.subr.bf16.mxu1 %v707_v0  ;;  %v664_v1 = vld [vmem:[%s918_s0 + $0x38] sm:$0xff]   ;;  %v665_v2 = vld [vmem:[%s918_s0 + $0x84] sm:$0xff]   ;;  %v666_v3 = vld [vmem:[%s918_s0 + $0x30] sm:$0xff]  }
   0x2   :  { %663 = vset.pattern.permute.xlu0 %v707_v0  ;;  %111 = vmatpush1.bf16.msra.mxu0 %v664_v1  ;;  %v667_v4 = vld [vmem:[%s918_s0 + $0x7c] sm:$0xff]   ;;  %v668_v5 = vld [vmem:[%s918_s0 + $0x28] sm:$0xff]   ;;  %v669_v6 = vld [vmem:[%s918_s0 + $0x74] sm:$0xff]  }
   0x3   :  { %232 = vmatpush1.bf16.msra.mxu1 %v665_v2  ;;  %112 = vmatprep.subr.bf16.mxu0 %v707_v0  ;;  %v670_v7 = vld [vmem:[%s918_s0 + $0x20] sm:$0xff]   ;;  %v671_v8 = vld [vmem:[%s918_s0 + $0x6c] sm:$0xff]   ;;  %v672_v9 = vld [vmem:[%s918_s0 + $0x18] sm:$0xff]  }
   0x4   :  { %233 = vmatprep.subr.bf16.mxu1 %v707_v0  ;;  %v673_v10 = vld [vmem:[%s918_s0 + $0x64] sm:$0xff]   ;;  %v674_v11 = vld [vmem:[%s918_s0 + $0x10] sm:$0xff]   ;;  %v675_v12 = vld [vmem:[%s918_s0 + $0x5c] sm:$0xff]  }
   0x5   :  { %v684_v13 = vld [vmem:[%s919_s1 + $0x4] ss:$8 sps:$4 sm:$0xff]   ;;  %v677_v15 = vld [vmem:[%s918_s0 + $0x54] sm:$0xff]   ;;  %v680_v16 = vld [vmem:[%s918_s0 + $0x48] ss:$0 sps:$4 sm:$0x77]  }
   0x6   :  { %113 = vmatpush1.bf16.msra.mxu0 %v666_v3  ;;  %v676_v14 = vld [vmem:[%s918_s0 + $0x8] sm:$0xff]   ;;  %562 = vmatprep.mubr.msk.bf16.mxu0 %vm102_vm0, %v684_v13  ;;  %v678_v17 = vld [vmem:[%s918_s0] sm:$0xff]   ;;  %v681_v18 = vld [vmem:[%s918_s0 + $0x94] ss:$0 sps:$4 sm:$0x77]   ;;  %v108_v20 = vsel %vm106_vm1, %v680_v16, 0 }
   0x7   :  { %234 = vmatpush1.bf16.msra.mxu1 %v667_v4  ;;  %114 = vmatprep.subr.bf16.mxu0 %v707_v0  ;;  %v679_v19 = vld [vmem:[%s918_s0 + $0x4c] sm:$0xff]   ;;  %v229_v21 = vsel %vm106_vm1, %v681_v18, 0  ;;  %v682_v22 = vld [vmem:[%s918_s0 + $0x40] sm:$0xff]   ;;  %v690_v30 = vld [vmem:[%s918_s0 + $0x114] sm:$0xff]  }
   0x8   :  { %235 = vmatprep.subr.bf16.mxu1 %v707_v0  ;;  %592 = vmatprep.mubr.msk.bf16.mxu1 %vm102_vm0, %v684_v13  ;;  %v683_v23 = vld [vmem:[%s918_s0 + $0x8c] sm:$0xff]   ;;  %v819_v24 = vld [vmem:[%s919_s1] ss:$8 sps:$4 sm:$0xff]   ;;  %v693_v33 = vld [vmem:[%s918_s0 + $0xb8] sm:$0xff]  }
   0x9   :  { %v687_v25 = vld [vmem:[%s918_s0 + $0xd0] sm:$0xff]   ;;  %v688_v26 = vld [vmem:[%s918_s0 + $0x11c] sm:$0xff]   ;;  %v689_v28 = vld [vmem:[%s918_s0 + $0xc8] sm:$0xff]  }
   0xa   :  { %115 = vmatpush1.bf16.msra.mxu0 %v668_v5  ;;  %v520_v27 = vld [vmem:[%s920_s2] sm:$0xff]  ;;  %v521_v29 = vld [vmem:[%s920_s2 + $0x8] sm:$0xff]  ;;  %v695_v35 = vld [vmem:[%s918_s0 + $0xb0] sm:$0xff]  }
   0xb   :  { %236 = vmatpush1.bf16.msra.mxu1 %v669_v6  ;;  %116 = vmatprep.subr.bf16.mxu0 %v707_v0  ;;  %v691_v31 = vld [vmem:[%s918_s0 + $0xc0] sm:$0xff]   ;;  %v692_v32 = vld [vmem:[%s918_s0 + $0x10c] sm:$0xff]   ;;  %v698_v38 = vld [vmem:[%s918_s0 + $0xf4] sm:$0xff]  }
   0xc   :  { %237 = vmatprep.subr.bf16.mxu1 %v707_v0  ;;  %524 = vperm.xlu0 %663, %v520_v27   ;;  %v694_v34 = vld [vmem:[%s918_s0 + $0x104] sm:$0xff]   ;;  %v696_v36 = vld [vmem:[%s918_s0 + $0xfc] sm:$0xff]   ;;  %v700_v40 = vld [vmem:[%s918_s0 + $0xec] sm:$0xff]  }
   0xd   :  { %v697_v37 = vld [vmem:[%s918_s0 + $0xa8] sm:$0xff]   ;;  %v699_v39 = vld [vmem:[%s918_s0 + $0xa0] sm:$0xff]   ;;  %v701_v41 = vld [vmem:[%s918_s0 + $0x98] sm:$0xff]  }
   0xe   :  { %117 = vmatpush1.bf16.msra.mxu0 %v670_v7  ;;  %v702_v42 = vld [vmem:[%s918_s0 + $0xe4] sm:$0xff]   ;;  %v703_v43 = vld [vmem:[%s918_s0 + $0xe0] ss:$0 sps:$4 sm:$0x77]   ;;  %v705_v47 = vld [vmem:[%s918_s0 + $0xd8] sm:$0xff]  }
   0xf   :  { %238 = vmatpush1.bf16.msra.mxu1 %v671_v8  ;;  %118 = vmatprep.subr.bf16.mxu0 %v707_v0  ;;  %v704_v44 = vld [vmem:[%s918_s0 + $0x12c] ss:$0 sps:$4 sm:$0x77]   ;;  %v352_v45 = vsel %vm106_vm1, %v703_v43, 0  ;;  %v706_v48 = vld [vmem:[%s918_s0 + $0x124] sm:$0xff]  }
  0x10   :  { %239 = vmatprep.subr.bf16.mxu1 %v707_v0  ;;  %529 = vperm.xlu0 %663, %v521_v29   ;;  %v473_v46 = vsel %vm106_vm1, %v704_v44, 0 }
  0x12   :  { %119 = vmatpush1.bf16.msra.mxu0 %v672_v9 }
  0x13   :  { %240 = vmatpush1.bf16.msra.mxu1 %v673_v10  ;;  %120 = vmatprep.subr.bf16.mxu0 %v707_v0 }
  0x14   :  { %241 = vmatprep.subr.bf16.mxu1 %v707_v0 }
  0x16   :  { %121 = vmatpush1.bf16.msra.mxu0 %v674_v11 }
  0x17   :  { %242 = vmatpush1.bf16.msra.mxu1 %v675_v12  ;;  %122 = vmatprep.subr.bf16.mxu0 %v707_v0 }
  0x18   :  { %243 = vmatprep.subr.bf16.mxu1 %v707_v0 }
  0x1a   :  { %123 = vmatpush1.bf16.msra.mxu0 %v676_v14 }
  0x1b   :  { %244 = vmatpush1.bf16.msra.mxu1 %v677_v15  ;;  %124 = vmatprep.subr.bf16.mxu0 %v707_v0 }
  0x1c   :  { %245 = vmatprep.subr.bf16.mxu1 %v707_v0 }
  0x1e   :  { %125 = vmatpush1.bf16.msra.mxu0 %v678_v17 }
  0x1f   :  { %246 = vmatpush1.bf16.msra.mxu1 %v679_v19  ;;  %138 = vmatprep.subr.bf16.mxu0 %v707_v0 }
  0x20   :  { %259 = vmatprep.subr.bf16.mxu1 %v707_v0 }
  0x22   :  { %139 = vmatpush2.bf16.msra.mxu0 %v108_v20 }
  0x23   :  { %260 = vmatpush2.bf16.msra.mxu1 %v229_v21  ;;  %140 = vmatprep.subr.bf16.mxu0 %v707_v0 }
  0x24   :  { %261 = vmatprep.subr.bf16.mxu1 %v707_v0 }
  0x26   :  { %141 = vmatpush2.bf16.msra.mxu0 %v682_v22 }
  0x27   :  { %262 = vmatpush2.bf16.msra.mxu1 %v683_v23  ;;  %354 = vmatprep.subr.bf16.mxu0 %v707_v0 }
  0x28   :  { %475 = vmatprep.subr.bf16.mxu1 %v707_v0 }
  0x29   :  { %143 = vmatmul.mubr.bf16.vlgmr.msra.gmra.mxu0 %v819_v24 }
  0x2a   :  { %264 = vmatmul.mubr.bf16.vlgmr.msra.gmra.mxu1 %v819_v24  ;;  %355 = vmatpush1.bf16.msra.mxu0 %v687_v25 }
  0x2b   :  { %476 = vmatpush1.bf16.msra.mxu1 %v688_v26  ;;  %356 = vmatprep.subr.bf16.mxu0 %v707_v0 }
  0x2c   :  { %477 = vmatprep.subr.bf16.mxu1 %v707_v0  ;;  %622 = vmatprep.mubr.msk.bf16.mxu0 %vm102_vm0, %v684_v13 }
  0x2d   :  { %652 = vmatprep.mubr.msk.bf16.mxu1 %vm102_vm0, %v684_v13 }
  0x2e   :  { %357 = vmatpush1.bf16.msra.mxu0 %v689_v28 }
  0x2f   :  { %478 = vmatpush1.bf16.msra.mxu1 %v690_v30  ;;  %358 = vmatprep.subr.bf16.mxu0 %v707_v0 }
  0x30   :  { %479 = vmatprep.subr.bf16.mxu1 %v707_v0 }
  0x32   :  { %359 = vmatpush1.bf16.msra.mxu0 %v691_v31 }
  0x33   :  { %480 = vmatpush1.bf16.msra.mxu1 %v692_v32  ;;  %360 = vmatprep.subr.bf16.mxu0 %v707_v0 }
  0x34   :  { %481 = vmatprep.subr.bf16.mxu1 %v707_v0 }
  0x36   :  { %361 = vmatpush1.bf16.msra.mxu0 %v693_v33 }
  0x37   :  { %482 = vmatpush1.bf16.msra.mxu1 %v694_v34  ;;  %362 = vmatprep.subr.bf16.mxu0 %v707_v0 }
  0x38   :  { %483 = vmatprep.subr.bf16.mxu1 %v707_v0 }
  0x3a   :  { %363 = vmatpush1.bf16.msra.mxu0 %v695_v35 }
  0x3b   :  { %484 = vmatpush1.bf16.msra.mxu1 %v696_v36  ;;  %364 = vmatprep.subr.bf16.mxu0 %v707_v0 }
  0x3c   :  { %485 = vmatprep.subr.bf16.mxu1 %v707_v0 }
  0x3e   :  { %365 = vmatpush1.bf16.msra.mxu0 %v697_v37 }
  0x3f   :  { %486 = vmatpush1.bf16.msra.mxu1 %v698_v38  ;;  %366 = vmatprep.subr.bf16.mxu0 %v707_v0 }
  0x40   :  { %487 = vmatprep.subr.bf16.mxu1 %v707_v0 }
  0x42   :  { %367 = vmatpush1.bf16.msra.mxu0 %v699_v39 }
  0x43   :  { %488 = vmatpush1.bf16.msra.mxu1 %v700_v40  ;;  %368 = vmatprep.subr.bf16.mxu0 %v707_v0 }
  0x44   :  { %489 = vmatprep.subr.bf16.mxu1 %v707_v0 }
  0x46   :  { %369 = vmatpush1.bf16.msra.mxu0 %v701_v41 }
  0x47   :  { %490 = vmatpush1.bf16.msra.mxu1 %v702_v42  ;;  %382 = vmatprep.subr.bf16.mxu0 %v707_v0 }
  0x48   :  { %503 = vmatprep.subr.bf16.mxu1 %v707_v0 }
  0x4a   :  { %383 = vmatpush2.bf16.msra.mxu0 %v352_v45 }
  0x4b   :  { %504 = vmatpush2.bf16.msra.mxu1 %v473_v46  ;;  %384 = vmatprep.subr.bf16.mxu0 %v707_v0 }
  0x4c   :  { %505 = vmatprep.subr.bf16.mxu1 %v707_v0 }
  0x4e   :  { %385 = vmatpush2.bf16.msra.mxu0 %v705_v47 }
  0x4f   :  { %506 = vmatpush2.bf16.msra.mxu1 %v706_v48 }
  0x51   :  { %387 = vmatmul.mubr.bf16.vlgmr.msra.gmra.mxu0 %v819_v24 }
  0x52   :  { %508 = vmatmul.mubr.bf16.vlgmr.msra.gmra.mxu1 %v819_v24 }
  0x87   :  { %v525_v62 = vpop.permute.xlu0 %524 }
  0x8b   :  { %v530_v9 = vpop.permute.xlu0 %529 }
  0xe9   :  { %v144_v49 = vpop.f32.mrf.mxu0 }
  0xea   :  { %v265_v50 = vpop.f32.mrf.mxu1 }
  0xeb   :  { %v146_v51 = vpop.f32.mrf.mxu0  ;;  %v272_v59 = vmax.f32 %v144_v49, %v265_v50 }
  0xec   :  { %v267_v52 = vpop.f32.mrf.mxu1 }
  0xed   :  { %v147_v53 = vpop.f32.mrf.mxu0 }
  0xee   :  { %v268_v54 = vpop.f32.mrf.mxu1 }
  0xef   :  { %v149_v55 = vpop.f32.mrf.mxu0  ;;  %v273_v3 = vmax.f32 %v147_v53, %v268_v54 }
  0xf0   :  { %v270_v56 = vpop.f32.mrf.mxu1 }
 0x111   :  { %v388_v57 = vpop.f32.mrf.mxu0 }
 0x112   :  { %v509_v58 = vpop.f32.mrf.mxu1 }
 0x113   :  { %v516_v60 = vmax.f32 %v388_v57, %v509_v58  ;;  %v390_v61 = vpop.f32.mrf.mxu0 }
 0x114   :  { %v511_v63 = vpop.f32.mrf.mxu1 }
 0x115   :  { %v518_v0 = vmax.f32 %v272_v59, %v516_v60  ;;  %v391_v1 = vpop.f32.mrf.mxu0 }
 0x116   :  { %v512_v2 = vpop.f32.mrf.mxu1 }
 0x117   :  { %v517_v4 = vmax.f32 %v391_v1, %v512_v2  ;;  %v393_v5 = vpop.f32.mrf.mxu0  ;;  %v532_v7 = vadd.f32 %v525_v62, %v518_v0 }
 0x118   :  { %v514_v6 = vpop.f32.mrf.mxu1 }
 0x119   :  { %v519_v8 = vmax.f32 %v273_v3, %v517_v4  ;;  %v534_v11 = vmax.f32 %v532_v7, 0.0 }
 0x11b   :  { %v533_v10 = vadd.f32 %v530_v9, %v519_v8 }
 0x11d   :  { %v535_v12 = vmax.f32 %v533_v10, 0.0 }
 0x11f   :  { %v660_v13 = vpack.c.bf16 %v535_v12, %v534_v11 }
 0x121   :  { %661 = vst [vmem:[%s921_s3] sm:$0xff] %v660_v13  }

// kernel: net_forward.5
= control target key start
LH: loop header
LB: loop body
LE: loop exit
PB: predicated region body
PF: predicated region fallthrough
CT: control target
= control target key end

     0   :  { %v783_v1 = vmov 0   ;;  %v98_v20 = vlaneseq  ;;  %v784_v25 = vmov 1966171168   ;;  %vm264_vm0 = vcmask 130048   ;;  %s993_s0 = inlined_call_operand.vmem [shape: bf16[2,400], index: 0, kind: input, shape index: {}]   ;;  %s994_s1 = inlined_call_operand.vmem [shape: bf16[400,128], index: 1, kind: input, shape index: {}]   ;;  %s995_s2 = inlined_call_operand.vmem [shape: f32[1,128], index: 2, kind: input, shape index: {}]   ;;  %s996_s3 = inlined_call_operand.vmem [shape: bf16[128,128], index: 3, kind: input, shape index: {}]   ;;  %s997_s4 = inlined_call_operand.vmem [shape: f32[1,128], index: 4, kind: input, shape index: {}]   ;;  %s998_s5 = inlined_call_operand.vmem [shape: bf16[128,128], index: 5, kind: input, shape index: {}]   ;;  %s999_s6 = inlined_call_operand.vmem [shape: f32[1,128], index: 6, kind: input, shape index: {}]   ;;  %s1000_s7 = inlined_call_operand.hbm [shape: f32[2,128], index: 7, kind: output, shape index: {}]  }
   0x1   :  { %v720_v0 = vld [vmem:[%s994_s1 + $0x78] sm:$0xff]   ;;  %308 = vmatprep.subr.bf16.mxu1 %v783_v1  ;;  %v723_v4 = vld [vmem:[%s994_s1 + $0x70] sm:$0xff]   ;;  %v726_v7 = vld [vmem:[%s994_s1 + $0x68] sm:$0xff]   ;;  %v96_v26 = vunpack.c.l.s4 %v784_v25  ;;  %v785_v38 = vmov 0.0  }
   0x2   :  { %v721_v2 = vld [vmem:[%s994_s1 + $0xb8] sm:$0xff]   ;;  %635 = vmatprep.subr.bf16.mxu0 %v720_v0  ;;  %v724_v5 = vld [vmem:[%s994_s1 + $0xb0] sm:$0xff]   ;;  %v727_v8 = vld [vmem:[%s994_s1 + $0xa8] sm:$0xff]   ;;  %v99_v27 = vshrl.u32 %v98_v20, 7 }
   0x3   :  { %v722_v3 = vld [vmem:[%s994_s1 + $0x38] sm:$0xff]   ;;  %309 = vmatpush1.bf16.msra.mxu1 %v721_v2  ;;  %v725_v6 = vld [vmem:[%s994_s1 + $0x30] sm:$0xff]   ;;  %v728_v9 = vld [vmem:[%s994_s1 + $0x28] sm:$0xff]   ;;  %v97_v30 = vunpack.c.0.s8 %v96_v26 }
   0x4   :  { %636 = vmatpush3.bf16.msra.mxu0 %v722_v3  ;;  %310 = vmatprep.subr.bf16.mxu1 %v783_v1  ;;  %v729_v10 = vld [vmem:[%s994_s1 + $0x60] sm:$0xff]   ;;  %v732_v13 = vld [vmem:[%s994_s1 + $0x58] sm:$0xff]   ;;  %v735_v16 = vld [vmem:[%s994_s1 + $0x50] sm:$0xff]  }
   0x5   :  { %637 = vmatprep.subr.bf16.mxu0 %v723_v4  ;;  %v730_v11 = vld [vmem:[%s994_s1 + $0xa0] sm:$0xff]   ;;  %v733_v14 = vld [vmem:[%s994_s1 + $0x98] sm:$0xff]   ;;  %v736_v17 = vld [vmem:[%s994_s1 + $0x90] sm:$0xff]   ;;  %v100_v32 = vsub.s32 %v97_v30, %v99_v27 }
   0x6   :  { %v731_v12 = vld [vmem:[%s994_s1 + $0x20] sm:$0xff]   ;;  %v734_v15 = vld [vmem:[%s994_s1 + $0x18] sm:$0xff]   ;;  %v737_v18 = vld [vmem:[%s994_s1 + $0x10] sm:$0xff]  }
   0x7   :  { %311 = vmatpush1.bf16.msra.mxu1 %v724_v5  ;;  %v738_v19 = vld [vmem:[%s994_s1 + $0x48] sm:$0xff]   ;;  %v590_v23 = vld.sshfl [vmem:[%s993_s0] sm:$0x33 pattern:$0x75316420]  ;;  %v745_v34 = vld [vmem:[%s996_s3 + $0x38] sm:$0xff]  }
   0x8   :  { %638 = vmatpush3.bf16.msra.mxu0 %v725_v6  ;;  %312 = vmatprep.subr.bf16.mxu1 %v783_v1  ;;  %v739_v21 = vld [vmem:[%s994_s1 + $0x88] sm:$0xff]   ;;  %v741_v24 = vld [vmem:[%s994_s1 + $0x40] sm:$0xff]   ;;  %v94_v29 = vcombine.high %v590_v23, %v590_v23  ;;  %v101_v36 = vrot.slane %v590_v23, %v100_v32  ;;  %v746_v40 = vld [vmem:[%s996_s3 + $0x30] sm:$0xff]  }
   0x9   :  { %639 = vmatprep.subr.bf16.mxu0 %v726_v7  ;;  %v740_v22 = vld [vmem:[%s994_s1 + $0x8] sm:$0xff]   ;;  %v742_v28 = vld [vmem:[%s994_s1 + $0x80] sm:$0xff]  }
   0xa   :  { %v743_v31 = vld [vmem:[%s994_s1] sm:$0xff]   ;;  %v108_v35 = vrot.slane %v94_v29, %v100_v32  ;;  %v109_v39 = vcombine.high %v101_v36, %v101_v36 }
   0xb   :  { %313 = vmatpush1.bf16.msra.mxu1 %v727_v8  ;;  %v744_v33 = vld [vmem:[%s994_s1 + $0xc0] sm:$0xff]  }
   0xc   :  { %640 = vmatpush3.bf16.msra.mxu0 %v728_v9  ;;  %314 = vmatprep.subr.bf16.mxu1 %v783_v1  ;;  %v110_v37 = vcombine.high %v108_v35, %v108_v35 }
   0xd   :  { %641 = vmatprep.subr.bf16.mxu0 %v729_v10  ;;  %300 = vmatprep.mubr.bf16.mxu0 %v108_v35 }
   0xe   :  { %616 = vmatprep.mubr.msk.bf16.mxu1 %vm264_vm0, %v110_v37 }
   0xf   :  { %315 = vmatpush1.bf16.msra.mxu1 %v730_v11 }
  0x10   :  { %642 = vmatpush3.bf16.msra.mxu0 %v731_v12  ;;  %316 = vmatprep.subr.bf16.mxu1 %v783_v1 }
  0x11   :  { %643 = vmatprep.subr.bf16.mxu0 %v732_v13 }
  0x13   :  { %317 = vmatpush1.bf16.msra.mxu1 %v733_v14 }
  0x14   :  { %644 = vmatpush3.bf16.msra.mxu0 %v734_v15  ;;  %318 = vmatprep.subr.bf16.mxu1 %v783_v1 }
  0x15   :  { %645 = vmatprep.subr.bf16.mxu0 %v735_v16 }
  0x17   :  { %319 = vmatpush1.bf16.msra.mxu1 %v736_v17 }
  0x18   :  { %646 = vmatpush3.bf16.msra.mxu0 %v737_v18  ;;  %320 = vmatprep.subr.bf16.mxu1 %v783_v1 }
  0x19   :  { %647 = vmatprep.subr.bf16.mxu0 %v738_v19 }
  0x1b   :  { %321 = vmatpush1.bf16.msra.mxu1 %v739_v21 }
  0x1c   :  { %648 = vmatpush3.bf16.msra.mxu0 %v740_v22  ;;  %322 = vmatprep.subr.bf16.mxu1 %v783_v1 }
  0x1d   :  { %649 = vmatprep.subr.bf16.mxu0 %v741_v24 }
  0x1f   :  { %323 = vmatpush1.bf16.msra.mxu1 %v742_v28 }
  0x20   :  { %650 = vmatpush3.bf16.msra.mxu0 %v743_v31  ;;  %338 = vmatprep.subr.bf16.mxu1 %v783_v1 }
  0x21   :  { %675 = vmatprep.subr.bf16.mxu0 %v785_v38 }
  0x23   :  { %301 = vmatmul.mubr.bf16.vlgmr.msra.gmra.mxu0 %v101_v36  ;;  %339 = vmatpush2.bf16.msra.mxu1 %v744_v33 }
  0x24   :  { %676 = vmatpush3.bf16.msra.mxu0 %v745_v34  ;;  %695 = vmatprep.subr.bf16.mxu1 %v785_v38 }
  0x25   :  { %677 = vmatprep.subr.bf16.mxu0 %v785_v38 }
  0x26   :  { %341 = vmatmul.mubr.bf16.vlgmr.msra.gmra.mxu1 %v109_v39 }
  0x27   :  { %12 = vsyncpa [#allocation3], 0  ;;  %v747_v41 = vld [vmem:[%s996_s3 + $0x28] sm:$0xff]   ;;  %v748_v42 = vld [vmem:[%s996_s3 + $0x20] sm:$0xff]   ;;  %vm786_vm1 = vmmov 0   ;;  %s787_s16 = smov [#allocation2]  }
  0x28   :  { %678 = vmatpush3.bf16.msra.mxu0 %v746_v40  ;;  %v749_v43 = vld [vmem:[%s996_s3 + $0x18] sm:$0xff]   ;;  %v750_v44 = vld [vmem:[%s996_s3 + $0x10] sm:$0xff]   ;;  %v751_v45 = vld [vmem:[%s996_s3 + $0x8] sm:$0xff]   ;;  %691 = vmatprep.mubr.msk.bf16.mxu0 %vm786_vm1, %v785_v38  ;;  %s581_s17 = sshll.u32 %s787_s16, 4  ;;  %s582_s17 = int_to_ptr.vmem [resolvable:$true] %s581_s17 }
  0x29   :  { %679 = vmatprep.subr.bf16.mxu0 %v785_v38  ;;  %v752_v46 = vld [vmem:[%s996_s3] sm:$0xff]   ;;  %711 = vmatprep.mubr.msk.bf16.mxu1 %vm786_vm1, %v785_v38  ;;  %v753_v47 = vld [vmem:[%s998_s5 + $0x38] sm:$0xff]   ;;  %v754_v48 = vld [vmem:[%s998_s5 + $0x30] sm:$0xff]   ;;  %p766_p1 = scmp.lt.s32.totalorder %s582_s17, %s582_s17 }
  0x2a   :  { %696 = vmatpush3.bf16.msra.mxu1 %v753_v47  ;;  %v755_v49 = vld [vmem:[%s998_s5 + $0x28] sm:$0xff]   ;;  %v756_v50 = vld [vmem:[%s998_s5 + $0x20] sm:$0xff]   ;;  %v757_v51 = vld [vmem:[%s998_s5 + $0x18] sm:$0xff]  }
  0x2b   :  { %697 = vmatprep.subr.bf16.mxu1 %v785_v38  ;;  %v758_v52 = vld [vmem:[%s998_s5 + $0x10] sm:$0xff]   ;;  %v589_v55 = vld [vmem:[%s995_s2] ss:$0 sm:$0xff]  ;;  %v759_v3 = vld [vmem:[%s998_s5 + $0x8] sm:$0xff]  }
  0x2c   :  { %680 = vmatpush3.bf16.msra.mxu0 %v747_v41  ;;  %v760_v4 = vld [vmem:[%s998_s5] sm:$0xff]  }
  0x2d   :  { %681 = vmatprep.subr.bf16.mxu0 %v785_v38  ;;  %v617_v5 = vld [vmem:[%s997_s4] ss:$0 sm:$0xff]  ;;  %s761_s4 = scalar_lea.vmem %s582_s17, 32 }
  0x2e   :  { %698 = vmatpush3.bf16.msra.mxu1 %v754_v48  ;;  %v626_v13 = vld [vmem:[%s999_s6] ss:$0 sm:$0xff]  ;;  %p762_p0 = scmp.ne.s32.totalorder %s582_s17, %s761_s4  ;;  %p767_p2 = scmp.lt.s32.totalorder %s761_s4, %s761_s4 }
  0x2f   :  { %699 = vmatprep.subr.bf16.mxu1 %v785_v38 }
  0x30   :  { %682 = vmatpush3.bf16.msra.mxu0 %v748_v42  ;;  %p768_p3 = por %p767_p2, %p766_p1 }
  0x31   :  { %683 = vmatprep.subr.bf16.mxu0 %v785_v38 }
  0x32   :  { %700 = vmatpush3.bf16.msra.mxu1 %v755_v49  ;;  %p769_p4 = pnand %p768_p3, %p762_p0 }
  0x33   :  { %701 = vmatprep.subr.bf16.mxu1 %v785_v38 }
  0x34   :  { %684 = vmatpush3.bf16.msra.mxu0 %v749_v43 }
  0x35   :  { %685 = vmatprep.subr.bf16.mxu0 %v785_v38 }
  0x36   :  { %702 = vmatpush3.bf16.msra.mxu1 %v756_v50 }
  0x37   :  { %703 = vmatprep.subr.bf16.mxu1 %v785_v38 }
  0x38   :  { %686 = vmatpush3.bf16.msra.mxu0 %v750_v44 }
  0x39   :  { %687 = vmatprep.subr.bf16.mxu0 %v785_v38 }
  0x3a   :  { %704 = vmatpush3.bf16.msra.mxu1 %v757_v51 }
  0x3b   :  { %705 = vmatprep.subr.bf16.mxu1 %v785_v38 }
  0x3c   :  { %688 = vmatpush3.bf16.msra.mxu0 %v751_v45 }
  0x3d   :  { %689 = vmatprep.subr.bf16.mxu0 %v785_v38 }
  0x3e   :  { %706 = vmatpush3.bf16.msra.mxu1 %v758_v52 }
  0x3f   :  { %707 = vmatprep.subr.bf16.mxu1 %v785_v38 }
  0x40   :  { %690 = vmatpush3.bf16.msra.mxu0 %v752_v46 }
  0x42   :  { %708 = vmatpush3.bf16.msra.mxu1 %v759_v3 }
  0x43   :  { %709 = vmatprep.subr.bf16.mxu1 %v785_v38 }
  0x46   :  { %710 = vmatpush3.bf16.msra.mxu1 %v760_v4 }
  0xe3   :  { %v651_v53 = vpop.f32.mrf.mxu0 }
  0xe5   :  { %v652_v54 = vpop.f32.mrf.mxu0 }
  0xe6   :  { %v653_v56 = vadd.f32 %v652_v54, %v651_v53  ;;  %v342_v57 = vpop.f32.mrf.mxu1 }
  0xe7   :  { %v654_v58 = vpop.f32.mrf.mxu0 }
  0xe8   :  { %v303_v59 = vadd.f32 %v653_v56, %v589_v55  ;;  %v344_v60 = vpop.f32.mrf.mxu1 }
  0xe9   :  { %v655_v61 = vpop.f32.mrf.mxu0 }
  0xea   :  { %v343_v62 = vadd.f32 %v342_v57, %v303_v59  ;;  %v345_v63 = vpop.f32.mrf.mxu1 }
  0xec   :  { %v348_v0 = vmax.f32 %v343_v62, 0.0  ;;  %v346_v1 = vpop.f32.mrf.mxu1 }
  0xee   :  { %v349_v2 = vpack.c.bf16 %v348_v0, %v348_v0 }
  0xf0   :  { %692 = vmatmul.mubr.bf16.vlgmr.msra.gmra.mxu0 %v349_v2 }
 0x1b0   :  { %v455_v6 = vpop.f32.mrf.mxu0 }
 0x1b1   :  { %v456_v7 = vadd.f32 %v617_v5, %v455_v6 }
 0x1b2   :  { %v693_v8 = vpop.f32.mrf.mxu0 }
 0x1b3   :  { %v461_v9 = vmax.f32 %v456_v7, 0.0 }
 0x1b4   :  { %v458_v10 = vpop.f32.mrf.mxu0 }
 0x1b5   :  { %v462_v11 = vpack.c.bf16 %v461_v9, %v461_v9 }
 0x1b6   :  { %v694_v12 = vpop.f32.mrf.mxu0 }
 0x1b7   :  { %712 = vmatmul.mubr.bf16.vlgmr.msra.gmra.mxu1 %v462_v11 }
 0x277   :  { %v568_v14 = vpop.f32.mrf.mxu1 }
 0x278   :  { %v569_v15 = vadd.f32 %v626_v13, %v568_v14 }
 0x279   :  { %v713_v16 = vpop.f32.mrf.mxu1 }
 0x27a   :  { %574 = vst [vmem:[#allocation2] sm:$0x3] %v569_v15 }
 0x27b   :  { %v571_v17 = vpop.f32.mrf.mxu1 }
 0x27c   :  { %772 = shalt.err (!%p769_p4)
}
 0x27d   :  { %584 = dma.vmem_to_hbm [thread:$0]  %s582_s17, 32, %s1000_s7, [#allocation3]   ;;  %v714_v18 = vpop.f32.mrf.mxu1 }
 0x27e   :  { %781 = dma.done.wait [#allocation3], 32  }
 0x27f   :  { %782 = vsyncadd [#allocation3], 4294967264 }
 0x280   :  { %588 = vsyncpa [#allocation3], 1 }

</bundles_post_ra>
